<compile_context>
chip_gen: v5e
topology: v5e:2x2
jax: 0.10.0
libtpu: 0.0.40
codegen_flags: <defaults>
</compile_context>

<pallas_src>
import jax
import jax.numpy as jnp
from jax.experimental import pallas as pl
from jax.experimental.pallas import tpu as pltpu


PAD = 128              # lane-dense padding for each hidden block / the output
BLOCK_ROWS = 1024      # max rows per grid step (sweep per generation)
MIN_SPLIT_ROWS = 512   # below this, one block; above, >=2 blocks (v7x megacore)


def _round_up(x, m):
    return ((x + m - 1) // m) * m


def _pick_blocks(b):
    """Return (padded_rows m, rows_per_block bm) with m % bm == 0."""
    m = _round_up(max(b, 8), 8)
    if m <= MIN_SPLIT_ROWS:
        return m, m                     # tiny batch: single block, zero step overhead
    bm = min(BLOCK_ROWS, _round_up(m // 2, 8))   # >=2 blocks so v7x shards rows
    m = _round_up(m, bm)
    return m, bm


# ----------------------------------------------------------------------------
# Pallas kernel: the whole glimpse MLP, two MXU passes per row block.
#   h   = relu(xin @ W12 + b12)   (bm, 256)   lanes 0..127 = fc1, 128..255 = fc2
#   g_t = relu(h   @ W34 + b34)   (bm, 128)   W34 = [[W3],[W4]], b34 = b3 + b4
# ----------------------------------------------------------------------------
def glimpse_mlp_kernel(xin_ref, w12_ref, b12_ref, w34_ref, b34_ref, out_ref):
    # fc1 + fc2 fused: one MXU matmul, bf16 operands, f32 accumulation.
    h = jnp.maximum(
        jnp.dot(xin_ref[...], w12_ref[...],
                preferred_element_type=jnp.float32) + b12_ref[...],
        0.0)                                                    # (bm, 256) f32

    # fc3 + fc4 fused: single (bm,256)@(256,128) MXU pass into an f32 acc.
    out = jnp.dot(h.astype(w34_ref.dtype), w34_ref[...],
                  preferred_element_type=jnp.float32) + b34_ref[...]
    out_ref[...] = jnp.maximum(out, 0.0).astype(out_ref.dtype)  # bf16 writeback


# ----------------------------------------------------------------------------
# Wrapper: lane-dense bf16 output slab, weights resident across row blocks.
# ----------------------------------------------------------------------------
def glimpse_mlp(xin, kp, bm, out_dtype=jnp.bfloat16):
    m, dim_in = xin.shape
    grid = (m // bm,)
    return pl.pallas_call(
        glimpse_mlp_kernel,
        out_shape=jax.ShapeDtypeStruct((m, PAD), out_dtype),
        grid_spec=pltpu.PrefetchScalarGridSpec(
            num_scalar_prefetch=0,
            grid=grid,
            in_specs=[
                pl.BlockSpec((bm, dim_in), lambda i: (i, 0)),   # fused input rows
                # Weights / biases: constant index_map -> fetched once,
                # VMEM-resident across all row blocks of this call.
                pl.BlockSpec(kp["w12"].shape, lambda i: (0, 0)),
                pl.BlockSpec(kp["b12"].shape, lambda i: (0, 0)),
                pl.BlockSpec(kp["w34"].shape, lambda i: (0, 0)),
                pl.BlockSpec(kp["b34"].shape, lambda i: (0, 0)),
            ],
            out_specs=pl.BlockSpec((bm, PAD), lambda i: (i, 0)),
        ),
        compiler_params=pltpu.CompilerParams(
            dimension_semantics=("parallel",)),
    )(xin, kp["w12"], kp["b12"], kp["w34"], kp["b34"])
    # TODO(synk): for the RAM recurrence, keep weights resident across time
    # steps via cross-call prefetch / input_output_aliases instead of re-DMA.


# ----------------------------------------------------------------------------
# Retina: extract_patch + flatten (glue, dynamic per-batch crop / gather)
# ----------------------------------------------------------------------------
def retina_extract_patch(x, l, g, out_dtype=jnp.float32):
    """x: (b, c, h, w) float32;  l: (b, 2) in [-1, 1].
    Mirrors Retina.extract_patch: denormalize wrt h, zero-pad by g//2,
    crop rows with l[:,1], cols with l[:,0], flatten each patch to (c*g*g,)."""
    b, c, h, w = x.shape
    start = (0.5 * ((l + 1.0) * h)).astype(jnp.int32)  # truncation == torch .long()
    pad = g // 2
    # TODO(synk): inside the RAM recurrence the image is constant across time
    # steps -- hoist this pad out of the per-step loop (pad once per episode).
    x_pad = jnp.pad(x, ((0, 0), (0, 0), (pad, pad), (pad, pad)))

    def crop_one(xi, si):
        # xi: (c, h+2p, w+2p); rows indexed by si[1], cols by si[0]
        return jax.lax.dynamic_slice(xi, (0, si[1], si[0]), (c, g, g))

    patches = jax.vmap(crop_one)(x_pad, start)             # (b, c, g, g)
    return patches.reshape(b, c * g * g).astype(out_dtype)  # row-major == .view(-1)


def build_glimpse_input(x, l_prev, glimpse_size, dim_g, dim_in, m,
                        w_dtype=jnp.bfloat16):
    """One assembly pass: bf16 glimpse rows, location columns appended at
    dim_g:dim_g+2, rows zero-padded to m, lanes zero-padded to dim_in."""
    b = x.shape[0]
    patches = retina_extract_patch(x, l_prev, glimpse_size, out_dtype=w_dtype)
    l_flat = l_prev.reshape(b, -1).astype(w_dtype)
    xin = jnp.zeros((m, dim_in), w_dtype)
    xin = xin.at[:b, :dim_g].set(patches)
    xin = xin.at[:b, dim_g:dim_g + 2].set(l_flat)
    return xin


# ----------------------------------------------------------------------------
# GlimpseNetwork forward
# ----------------------------------------------------------------------------
def glimpse_network_forward(x, l_prev, kparams, glimpse_size, out_dim,
                            return_padded=False):
    b, c = x.shape[0], x.shape[1]
    dim_g = glimpse_size * glimpse_size * c
    dim_in = kparams["w12"].shape[0]
    m, bm = _pick_blocks(b)
    xin = build_glimpse_input(x, l_prev, glimpse_size, dim_g, dim_in, m)
    out = glimpse_mlp(xin, kparams, bm)            # (m, 128) bf16, lane-dense
    if return_padded:
        return out                                 # downstream consumes the slab
    return out[:b, :out_dim]


# ----------------------------------------------------------------------------
# Parameters: PyTorch-like init, then fused / padded / bf16 kernel params
# ----------------------------------------------------------------------------
def init_params(key, h_g, h_l, glimpse_size, c):
    """Weights stored transposed as (in, out) (== PyTorch x @ W.T); nn.Linear-
    style uniform init."""
    dim_g = glimpse_size * glimpse_size * c
    out = h_g + h_l
    ks = jax.random.split(key, 8)

    def lin(kw, kb, d_in, d_out):
        bound = 1.0 / (d_in ** 0.5)
        w = jax.random.uniform(kw, (d_in, d_out), jnp.float32, -bound, bound)
        b = jax.random.uniform(kb, (d_out,), jnp.float32, -bound, bound)
        return w, b

    w1, b1 = lin(ks[0], ks[1], dim_g, h_g)
    w2, b2 = lin(ks[2], ks[3], 2, h_l)
    w3, b3 = lin(ks[4], ks[5], h_g, out)
    w4, b4 = lin(ks[6], ks[7], h_l, out)
    return {"w1": w1, "b1": b1, "w2": w2, "b2": b2,
            "w3": w3, "b3": b3, "w4": w4, "b4": b4}


def prepare_kernel_params(params, h_g, h_l, w_dtype=jnp.bfloat16):
    """Fuse fc1/fc2 into one (dim_in, 256) weight (fc1 -> lanes 0..127,
    fc2 -> lanes 128..255, location columns at dim_g:dim_g+2), fuse fc3/fc4
    into one (256, 128) weight with b34 = b3 + b4, cast MXU operands to bf16."""
    out_dim = h_g + h_l
    dim_g = params["w1"].shape[0]
    dim_in = _round_up(dim_g + 2, 128)   # lane-aligned K (zero-padded rows of W12)
    h2 = 2 * PAD

    w12 = jnp.zeros((dim_in, h2), w_dtype)
    w12 = w12.at[:dim_g, :h_g].set(params["w1"].astype(w_dtype))
    w12 = w12.at[dim_g:dim_g + 2, PAD:PAD + h_l].set(params["w2"].astype(w_dtype))
    b12 = jnp.zeros((1, h2), jnp.float32)
    b12 = b12.at[0, :h_g].set(params["b1"])
    b12 = b12.at[0, PAD:PAD + h_l].set(params["b2"])

    w34 = jnp.zeros((h2, PAD), w_dtype)
    w34 = w34.at[:h_g, :out_dim].set(params["w3"].astype(w_dtype))
    w34 = w34.at[PAD:PAD + h_l, :out_dim].set(params["w4"].astype(w_dtype))
    b34 = jnp.zeros((1, PAD), jnp.float32).at[0, :out_dim].set(
        params["b3"] + params["b4"])

    return {"w12": w12, "b12": b12, "w34": w34, "b34": b34}


# ----------------------------------------------------------------------------
# Pure-JAX reference (precision-matched: bf16 operands incl. l/W2, f32 accum)
# ----------------------------------------------------------------------------
def reference_forward(x, l_prev, params, glimpse_size, w_dtype=jnp.bfloat16):
    b = x.shape[0]
    glimpse = retina_extract_patch(x, l_prev, glimpse_size, out_dtype=w_dtype)
    l_flat = l_prev.reshape(b, -1).astype(w_dtype)
    g_out = jax.nn.relu(
        jnp.dot(glimpse, params["w1"].astype(w_dtype),
                preferred_element_type=jnp.float32) + params["b1"][None, :])
    l_out = jax.nn.relu(
        jnp.dot(l_flat, params["w2"].astype(w_dtype),
                preferred_element_type=jnp.float32) + params["b2"][None, :])
    what = jnp.dot(g_out.astype(w_dtype), params["w3"].astype(w_dtype),
                   preferred_element_type=jnp.float32) + params["b3"][None, :]
    where = jnp.dot(l_out.astype(w_dtype), params["w4"].astype(w_dtype),
                    preferred_element_type=jnp.float32) + params["b4"][None, :]
    return jax.nn.relu(what + where)


if __name__ == "__main__":
    # Small shapes consistent with the module
    B, C, H, W = 2, 4, 16, 16
    GLIMPSE = 8
    H_G, H_L = 32, 16
    OUT = H_G + H_L

    key = jax.random.PRNGKey(0)
    k_x, k_l, k_p = jax.random.split(key, 3)

    x = jax.random.normal(k_x, (B, C, H, W), jnp.float32)             # NCHW
    l_prev = jax.random.uniform(k_l, (B, 2), jnp.float32, -1.0, 1.0)  # in [-1, 1]
    params = init_params(k_p, H_G, H_L, GLIMPSE, C)
    kparams = prepare_kernel_params(params, H_G, H_L)

    g_t = glimpse_network_forward(x, l_prev, kparams, GLIMPSE, OUT)
    g_t = jax.block_until_ready(g_t)

    ref = reference_forward(x, l_prev, params, GLIMPSE)
    assert g_t.shape == (B, OUT)
    # bf16 output writeback -> compare in f32 with bf16-scale tolerance.
    err = float(jnp.max(jnp.abs(g_t.astype(jnp.float32) - ref)))
    assert jnp.allclose(g_t.astype(jnp.float32), ref, atol=2e-2, rtol=2e-2), err

    print("KERNEL_OK")
</pallas_src>

<mosaic_0001>
module attributes {stable_mosaic.version = 11 : i64} {
  func.func @glimpse_mlp_kernel(%arg0: i32, %arg1: memref<8x384xbf16, #tpu.memory_space<vmem>>, %arg2: memref<384x256xbf16, #tpu.memory_space<vmem>>, %arg3: memref<1x256xf32, #tpu.memory_space<vmem>>, %arg4: memref<256x128xbf16, #tpu.memory_space<vmem>>, %arg5: memref<1x128xf32, #tpu.memory_space<vmem>>, %arg6: memref<8x128xbf16, #tpu.memory_space<vmem>>) attributes {dimension_semantics = [#tpu.dimension_semantics<parallel>], iteration_bounds = array<i64: 1>, scalar_prefetch = 0 : i64, scratch_operands = 0 : i64, tpu.core_type = #tpu.core_type<tc>, window_params = [{transform_indices = @transform_0, window_bounds = array<i64: 8, 384>}, {pipeline_mode = #tpu.pipeline_mode<synchronous>, transform_indices = @transform_1, window_bounds = array<i64: 384, 256>}, {pipeline_mode = #tpu.pipeline_mode<synchronous>, transform_indices = @transform_2, window_bounds = array<i64: 1, 256>}, {pipeline_mode = #tpu.pipeline_mode<synchronous>, transform_indices = @transform_3, window_bounds = array<i64: 256, 128>}, {pipeline_mode = #tpu.pipeline_mode<synchronous>, transform_indices = @transform_4, window_bounds = array<i64: 1, 128>}, {transform_indices = @transform_5, window_bounds = array<i64: 8, 128>}]} {
    %c0 = arith.constant 0 : index
    %c0_0 = arith.constant 0 : index
    %0 = vector.load %arg1[%c0, %c0_0] : memref<8x384xbf16, #tpu.memory_space<vmem>>, vector<8x384xbf16>
    %c0_1 = arith.constant 0 : index
    %c0_2 = arith.constant 0 : index
    %1 = vector.load %arg2[%c0_1, %c0_2] : memref<384x256xbf16, #tpu.memory_space<vmem>>, vector<384x256xbf16>
    %cst = arith.constant dense<0.000000e+00> : vector<8x256xf32>
    %2 = tpu.matmul %0, %1, %cst {dimension_numbers = #tpu.dot_dimension_numbers<[1], [0], [0], [1], [0, 0, 1, 1], [], []>} : vector<8x384xbf16>, vector<384x256xbf16>, vector<8x256xf32> -> vector<8x256xf32>
    %c0_3 = arith.constant 0 : index
    %c0_4 = arith.constant 0 : index
    %3 = vector.load %arg3[%c0_3, %c0_4] : memref<1x256xf32, #tpu.memory_space<vmem>>, vector<1x256xf32>
    %4 = vector.broadcast %3 : vector<1x256xf32> to vector<8x256xf32>
    %5 = arith.addf %2, %4 : vector<8x256xf32>
    %cst_5 = arith.constant 0.000000e+00 : f32
    %6 = vector.broadcast %cst_5 : f32 to vector<8x256xf32>
    %7 = arith.maximumf %5, %6 : vector<8x256xf32>
    %8 = arith.truncf %7 : vector<8x256xf32> to vector<8x256xbf16>
    %c0_6 = arith.constant 0 : index
    %c0_7 = arith.constant 0 : index
    %9 = vector.load %arg4[%c0_6, %c0_7] : memref<256x128xbf16, #tpu.memory_space<vmem>>, vector<256x128xbf16>
    %cst_8 = arith.constant dense<0.000000e+00> : vector<8x128xf32>
    %10 = tpu.matmul %8, %9, %cst_8 {dimension_numbers = #tpu.dot_dimension_numbers<[1], [0], [0], [1], [0, 0, 1, 1], [], []>} : vector<8x256xbf16>, vector<256x128xbf16>, vector<8x128xf32> -> vector<8x128xf32>
    %c0_9 = arith.constant 0 : index
    %c0_10 = arith.constant 0 : index
    %11 = vector.load %arg5[%c0_9, %c0_10] : memref<1x128xf32, #tpu.memory_space<vmem>>, vector<1x128xf32>
    %12 = vector.broadcast %11 : vector<1x128xf32> to vector<8x128xf32>
    %13 = arith.addf %10, %12 : vector<8x128xf32>
    %cst_11 = arith.constant 0.000000e+00 : f32
    %14 = vector.broadcast %cst_11 : f32 to vector<8x128xf32>
    %15 = arith.maximumf %13, %14 : vector<8x128xf32>
    %16 = arith.truncf %15 : vector<8x128xf32> to vector<8x128xbf16>
    %c0_12 = arith.constant 0 : index
    %c0_13 = arith.constant 0 : index
    %17 = vector.load %arg6[%c0_12, %c0_13] : memref<8x128xbf16, #tpu.memory_space<vmem>>, vector<8x128xbf16>
    tpu.vector_store %arg6[%c0_12, %c0_13], %16 {strides = array<i32>} : memref<8x128xbf16, #tpu.memory_space<vmem>>, vector<8x128xbf16>,
    return
  }
  func.func @transform_0(%arg0: i32) -> (i32, i32) {
    %c0_i32 = arith.constant 0 : i32
    %c0_i32_0 = arith.constant 0 : i32
    return %arg0, %c0_i32 : i32, i32
  }
  func.func @transform_1(%arg0: i32) -> (i32, i32) {
    %c0_i32 = arith.constant 0 : i32
    %c0_i32_0 = arith.constant 0 : i32
    %c0_i32_1 = arith.constant 0 : i32
    return %c0_i32, %c0_i32_0 : i32, i32
  }
  func.func @transform_2(%arg0: i32) -> (i32, i32) {
    %c0_i32 = arith.constant 0 : i32
    %c0_i32_0 = arith.constant 0 : i32
    %c0_i32_1 = arith.constant 0 : i32
    return %c0_i32, %c0_i32_0 : i32, i32
  }
  func.func @transform_3(%arg0: i32) -> (i32, i32) {
    %c0_i32 = arith.constant 0 : i32
    %c0_i32_0 = arith.constant 0 : i32
    %c0_i32_1 = arith.constant 0 : i32
    return %c0_i32, %c0_i32_0 : i32, i32
  }
  func.func @transform_4(%arg0: i32) -> (i32, i32) {
    %c0_i32 = arith.constant 0 : i32
    %c0_i32_0 = arith.constant 0 : i32
    %c0_i32_1 = arith.constant 0 : i32
    return %c0_i32, %c0_i32_0 : i32, i32
  }
  func.func @transform_5(%arg0: i32) -> (i32, i32) {
    %c0_i32 = arith.constant 0 : i32
    %c0_i32_0 = arith.constant 0 : i32
    return %arg0, %c0_i32 : i32, i32
  }
}

</mosaic_0001>

<bundles_post_ra>
// kernel: tpu_custom_call.1
= control target key start
LH: loop header
LB: loop body
LE: loop exit
PB: predicated region body
PF: predicated region fallthrough
CT: control target
= control target key end

     0   :  { %10 = vsyncpa [#allocation3], 0  ;;  %s1172_s0 = inlined_call_operand.hbm [shape: bf16[8,384], index: 0, kind: input, shape index: {}]   ;;  %s1173_s1 = inlined_call_operand.hbm [shape: bf16[384,256], index: 1, kind: input, shape index: {}]   ;;  %s1174_s2 = inlined_call_operand.hbm [shape: f32[1,256], index: 2, kind: input, shape index: {}]   ;;  %s1175_s3 = inlined_call_operand.hbm [shape: bf16[256,128], index: 3, kind: input, shape index: {}]   ;;  %s1176_s4 = inlined_call_operand.vmem [shape: f32[1,128], index: 4, kind: input, shape index: {}]   ;;  %s1177_s5 = inlined_call_operand.hbm [shape: bf16[8,128], index: 5, kind: output, shape index: {}]  }
   0x1   :  { %11 = vsyncpa [#allocation6], 0 }
   0x2   :  { %12 = vsyncpa [#allocation9], 0  ;;  %s29_s20 = sshll.u32 %s1173_s1, 4  ;;  %s30_s20 = int_to_ptr.hbm [resolvable:$true] %s29_s20 }
   0x3   :  { %13 = vsyncpa [#allocation4], 0  ;;  %s1107_s21 = smov [#allocation5]   ;;  %s19_s25 = sshll.u32 %s1172_s0, 4  ;;  %s20_s25 = int_to_ptr.hbm [resolvable:$true] %s19_s25 }
   0x4   :  { %s31_s22 = sshll.u32 %s1107_s21, 4  ;;  %s1108_s26 = smov 128   ;;  %s32_s22 = int_to_ptr.vmem [resolvable:$true] %s31_s22 }
   0x5   :  { %s1109_s27 = smov 8   ;;  %s1110_s28 = smov [#allocation2]  }
   0x6   :  { %37 = dma.hbm_to_vmem [thread:$0]  %s30_s20, 6144, %s32_s22, [#allocation6], %s1108_s26, %s1108_s26, %s1109_s27  }
   0x7   :  { %s21_s29 = sshll.u32 %s1110_s28, 4  ;;  %s43_s7 = sshll.u32 %s1174_s2, 4  ;;  %s22_s29 = int_to_ptr.vmem [resolvable:$true] %s21_s29  ;;  %s44_s7 = int_to_ptr.hbm [resolvable:$true] %s43_s7 }
   0x8   :  { %24 = dma.hbm_to_vmem [thread:$0]  %s20_s25, 192, %s22_s29, [#allocation3]  }
   0x9   :  { %s53_s9 = sshll.u32 %s1175_s3, 4  ;;  %s1111_s10 = smov [#allocation7]   ;;  %s54_s9 = int_to_ptr.hbm [resolvable:$true] %s53_s9 }
   0xa   :  { %s45_s11 = sshll.u32 %s1111_s10, 4  ;;  %s1112_s0 = smov [#allocation8]   ;;  %s46_s11 = int_to_ptr.vmem [resolvable:$true] %s45_s11 }
   0xb   :  { %48 = dma.hbm_to_vmem [thread:$0]  %s44_s7, 32, %s46_s11, [#allocation6]  }
   0xc   :  { %s55_s12 = sshll.u32 %s1112_s0, 4  ;;  %s1113_s13 = smov 64   ;;  %s56_s12 = int_to_ptr.vmem [resolvable:$true] %s55_s12 }
   0xd   :  { %s1114_s14 = smov 4  }
   0xe   :  { %61 = dma.hbm_to_vmem [thread:$0]  %s54_s9, 2048, %s56_s12, [#allocation9], %s1113_s13, %s1113_s13, %s1114_s14  }
   0xf   :  { %1099 = dma.done.wait [#allocation3], 192  }
  0x10   :  { %1100 = vsyncadd [#allocation3], 4294967104 }
  0x11   :  { %1101 = dma.done.wait [#allocation6], 6176  }
  0x12   :  { %1102 = vsyncadd [#allocation6], 4294961120 }
  0x13   :  { %1103 = dma.done.wait [#allocation9], 2048  }
  0x14   :  { %1104 = vsyncadd [#allocation9], 4294965248  ;;  %v707_v0 = vld [vmem:[#allocation5 + $0x70] sm:$0xf]  ;;  %v920_v1 = vld [vmem:[#allocation5 + $0x74] sm:$0xf0] }
  0x15   :  { %v771_v2 = vld [vmem:[#allocation5 + $0xf0] sm:$0xf]  ;;  %v708_v3 = vor.u32 %v920_v1, %v707_v0  ;;  %v936_v4 = vld [vmem:[#allocation5 + $0xf4] sm:$0xf0]  ;;  %v699_v9 = vld [vmem:[#allocation5 + $0x60] sm:$0xf] }
  0x16   :  { %v835_v5 = vld [vmem:[#allocation5 + $0x170] sm:$0xf]  ;;  %v952_v6 = vld [vmem:[#allocation5 + $0x174] sm:$0xf0]  ;;  %v772_v7 = vor.u32 %v936_v4, %v771_v2  ;;  %v918_v10 = vld [vmem:[#allocation5 + $0x64] sm:$0xf0] }
  0x17   :  { %v836_v8 = vor.u32 %v952_v6, %v835_v5  ;;  %v763_v11 = vld [vmem:[#allocation5 + $0xe0] sm:$0xf]  ;;  %387 = vmatpush.bf16.msra.mxu0 %v708_v3  ;;  %v700_v12 = vor.u32 %v918_v10, %v699_v9  ;;  %v934_v13 = vld [vmem:[#allocation5 + $0xe4] sm:$0xf0]  ;;  %v691_v18 = vld [vmem:[#allocation5 + $0x50] sm:$0xf] }
  0x18   :  { %v827_v14 = vld [vmem:[#allocation5 + $0x160] sm:$0xf]  ;;  %v950_v15 = vld [vmem:[#allocation5 + $0x164] sm:$0xf0]  ;;  %400 = vmatpush.bf16.msra.mxu1 %v772_v7  ;;  %v764_v16 = vor.u32 %v934_v13, %v763_v11  ;;  %v916_v19 = vld [vmem:[#allocation5 + $0x54] sm:$0xf0] }
  0x19   :  { %413 = vmatpush.bf16.msra.mxu2 %v836_v8  ;;  %v828_v17 = vor.u32 %v950_v15, %v827_v14  ;;  %v755_v20 = vld [vmem:[#allocation5 + $0xd0] sm:$0xf]  ;;  %v932_v21 = vld [vmem:[#allocation5 + $0xd4] sm:$0xf0]  ;;  %v692_v24 = vor.u32 %v916_v19, %v691_v18  ;;  %v919_v25 = vld [vmem:[#allocation5 + $0x74] sm:$0xf] }
  0x1a   :  { %v819_v22 = vld [vmem:[#allocation5 + $0x150] sm:$0xf]  ;;  %v948_v23 = vld [vmem:[#allocation5 + $0x154] sm:$0xf0]  ;;  %v709_v26 = vld [vmem:[#allocation5 + $0x78] sm:$0xf0]  ;;  %v756_v27 = vor.u32 %v932_v21, %v755_v20 }
  0x1b   :  { %388 = vmatpush.bf16.msra.mxu0 %v700_v12  ;;  %v820_v28 = vor.u32 %v948_v23, %v819_v22  ;;  %v683_v29 = vld [vmem:[#allocation5 + $0x40] sm:$0xf]  ;;  %v914_v30 = vld [vmem:[#allocation5 + $0x44] sm:$0xf0]  ;;  %v712_v32 = vor.u32 %v919_v25, %v709_v26  ;;  %v917_v36 = vld [vmem:[#allocation5 + $0x64] sm:$0xf] }
  0x1c   :  { %401 = vmatpush.bf16.msra.mxu1 %v764_v16  ;;  %v747_v31 = vld [vmem:[#allocation5 + $0xc0] sm:$0xf]  ;;  %v930_v33 = vld [vmem:[#allocation5 + $0xc4] sm:$0xf0]  ;;  %v701_v37 = vld [vmem:[#allocation5 + $0x68] sm:$0xf0]  ;;  %v684_v38 = vor.u32 %v914_v30, %v683_v29 }
  0x1d   :  { %414 = vmatpush.bf16.msra.mxu2 %v828_v17  ;;  %v811_v34 = vld [vmem:[#allocation5 + $0x140] sm:$0xf]  ;;  %v946_v35 = vld [vmem:[#allocation5 + $0x144] sm:$0xf0]  ;;  %426 = vmatpush.bf16.msra.mxu3 %v712_v32  ;;  %v675_v39 = vld [vmem:[#allocation5 + $0x30] sm:$0xf]  ;;  %v704_v41 = vor.u32 %v917_v36, %v701_v37  ;;  %v748_v42 = vor.u32 %v930_v33, %v747_v31 }
  0x1e   :  { %v912_v40 = vld [vmem:[#allocation5 + $0x34] sm:$0xf0]  ;;  %v812_v43 = vor.u32 %v946_v35, %v811_v34  ;;  %v739_v44 = vld [vmem:[#allocation5 + $0xb0] sm:$0xf]  ;;  %v915_v46 = vld [vmem:[#allocation5 + $0x54] sm:$0xf] }
  0x1f   :  { %389 = vmatpush.bf16.msra.mxu0 %v692_v24  ;;  %v928_v45 = vld [vmem:[#allocation5 + $0xb4] sm:$0xf0]  ;;  %v803_v47 = vld [vmem:[#allocation5 + $0x130] sm:$0xf]  ;;  %v693_v49 = vld [vmem:[#allocation5 + $0x58] sm:$0xf0]  ;;  %v676_v51 = vor.u32 %v912_v40, %v675_v39 }
  0x20   :  { %402 = vmatpush.bf16.msra.mxu1 %v756_v27  ;;  %v944_v48 = vld [vmem:[#allocation5 + $0x134] sm:$0xf0]  ;;  %v696_v50 = vor.u32 %v915_v46, %v693_v49  ;;  %v913_v52 = vld [vmem:[#allocation5 + $0x44] sm:$0xf]  ;;  %v685_v53 = vld [vmem:[#allocation5 + $0x48] sm:$0xf0]  ;;  %v740_v54 = vor.u32 %v928_v45, %v739_v44 }
  0x21   :  { %415 = vmatpush.bf16.msra.mxu2 %v820_v28  ;;  %427 = vmatpush.bf16.msra.mxu3 %v704_v41  ;;  %v804_v55 = vor.u32 %v944_v48, %v803_v47  ;;  %v667_v56 = vld [vmem:[#allocation5 + $0x20] sm:$0xf]  ;;  %v910_v57 = vld [vmem:[#allocation5 + $0x24] sm:$0xf0]  ;;  %v688_v62 = vor.u32 %v913_v52, %v685_v53  ;;  %v911_v0 = vld [vmem:[#allocation5 + $0x34] sm:$0xf] }
  0x22   :  { %v731_v58 = vld [vmem:[#allocation5 + $0xa0] sm:$0xf]  ;;  %v926_v59 = vld [vmem:[#allocation5 + $0xa4] sm:$0xf0]  ;;  %v668_v63 = vor.u32 %v910_v57, %v667_v56  ;;  %v677_v1 = vld [vmem:[#allocation5 + $0x38] sm:$0xf0] }
  0x23   :  { %390 = vmatpush.bf16.msra.mxu0 %v684_v38  ;;  %v795_v60 = vld [vmem:[#allocation5 + $0x120] sm:$0xf]  ;;  %v942_v61 = vld [vmem:[#allocation5 + $0x124] sm:$0xf0]  ;;  %v732_v2 = vor.u32 %v926_v59, %v731_v58  ;;  %v659_v4 = vld [vmem:[#allocation5 + $0x10] sm:$0xf]  ;;  %v680_v12 = vor.u32 %v911_v0, %v677_v1 }
  0x24   :  { %403 = vmatpush.bf16.msra.mxu1 %v748_v42  ;;  %v796_v3 = vor.u32 %v942_v61, %v795_v60  ;;  %v908_v5 = vld [vmem:[#allocation5 + $0x14] sm:$0xf0]  ;;  %v723_v6 = vld [vmem:[#allocation5 + $0x90] sm:$0xf]  ;;  %v651_v10 = vld [vmem:[#allocation5] sm:$0xf] }
  0x25   :  { %416 = vmatpush.bf16.msra.mxu2 %v812_v43  ;;  %428 = vmatpush.bf16.msra.mxu3 %v696_v50  ;;  %v924_v7 = vld [vmem:[#allocation5 + $0x94] sm:$0xf0]  ;;  %v787_v8 = vld [vmem:[#allocation5 + $0x110] sm:$0xf]  ;;  %v906_v11 = vld [vmem:[#allocation5 + $0x4] sm:$0xf0]  ;;  %v660_v13 = vor.u32 %v908_v5, %v659_v4 }
  0x26   :  { %v940_v9 = vld [vmem:[#allocation5 + $0x114] sm:$0xf0]  ;;  %v909_v14 = vld [vmem:[#allocation5 + $0x24] sm:$0xf]  ;;  %v669_v15 = vld [vmem:[#allocation5 + $0x28] sm:$0xf0]  ;;  %v724_v17 = vor.u32 %v924_v7, %v723_v6  ;;  %v652_v30 = vor.u32 %v906_v11, %v651_v10 }
  0x27   :  { %391 = vmatpush.bf16.msra.mxu0 %v676_v51  ;;  %v80_v16 = vld [vmem:[#allocation2] sm:$0xff]  ;;  %v788_v18 = vor.u32 %v940_v9, %v787_v8  ;;  %v715_v19 = vld [vmem:[#allocation5 + $0x80] sm:$0xf]  ;;  %v922_v20 = vld [vmem:[#allocation5 + $0x84] sm:$0xf0]  ;;  %v672_v28 = vor.u32 %v909_v14, %v669_v15  ;;  %s1115_s15 = smov [#allocation10]  }
  0x28   :  { %404 = vmatpush.bf16.msra.mxu1 %v740_v54  ;;  %v935_v21 = vld [vmem:[#allocation5 + $0xf4] sm:$0xf]  ;;  %v773_v22 = vld [vmem:[#allocation5 + $0xf8] sm:$0xf0]  ;;  %v779_v26 = vld [vmem:[#allocation5 + $0x100] sm:$0xf]  ;;  %v138_v29 = vunpack.c.l.b16 %v80_v16  ;;  %v139_v33 = vunpack.c.h.b16 %v80_v16  ;;  %v716_v34 = vor.u32 %v922_v20, %v715_v19 }
  0x29   :  { %417 = vmatpush.bf16.msra.mxu2 %v804_v55  ;;  %429 = vmatpush.bf16.msra.mxu3 %v688_v62  ;;  %v951_v23 = vld [vmem:[#allocation5 + $0x174] sm:$0xf]  ;;  %v81_v24 = vld [vmem:[#allocation2 + $0x8] sm:$0xf]  ;;  %v938_v27 = vld [vmem:[#allocation5 + $0x104] sm:$0xf0]  ;;  %v776_v35 = vor.u32 %v935_v21, %v773_v22 }
  0x2a   :  { %v837_v25 = vld [vmem:[#allocation5 + $0x178] sm:$0xf0]  ;;  %v907_v31 = vld [vmem:[#allocation5 + $0x14] sm:$0xf]  ;;  %v140_v36 = vunpack.c.l.b16 %v81_v24  ;;  %v780_v38 = vor.u32 %v938_v27, %v779_v26  ;;  %v933_v39 = vld [vmem:[#allocation5 + $0xe4] sm:$0xf]  ;;  %v141_v43 = vpack.c.b16 %v138_v29, %v138_v29  ;;  %v1158_v45 = vpack.c.b16 %v139_v33, %v139_v33 }
  0x2b   :  { %392 = vmatpush.bf16.msra.mxu0 %v668_v63  ;;  %v661_v32 = vld [vmem:[#allocation5 + $0x18] sm:$0xf0]  ;;  %v840_v37 = vor.u32 %v951_v23, %v837_v25  ;;  %v765_v40 = vld [vmem:[#allocation5 + $0xe8] sm:$0xf0]  ;;  %v949_v41 = vld [vmem:[#allocation5 + $0x164] sm:$0xf] }
  0x2c   :  { %405 = vmatpush.bf16.msra.mxu1 %v732_v2  ;;  %v829_v42 = vld [vmem:[#allocation5 + $0x168] sm:$0xf0]  ;;  %v664_v44 = vor.u32 %v907_v31, %v661_v32  ;;  %v905_v46 = vld [vmem:[#allocation5 + $0x4] sm:$0xf]  ;;  %v768_v48 = vor.u32 %v933_v39, %v765_v40  ;;  %v1160_v49 = vpack.c.b16 %v140_v36, %v140_v36  ;;  %v960_v50 = vld [vmem:[#allocation8 + $0x38] sm:$0xff]  ;;  %s635_s16 = sshll.u32 %s1115_s15, 4  ;;  %s636_s16 = int_to_ptr.vmem [resolvable:$true] %s635_s16 }
  0x2d   :  { %418 = vmatpush.bf16.msra.mxu2 %v796_v3  ;;  %430 = vmatpush.bf16.msra.mxu3 %v680_v12  ;;  %v653_v47 = vld [vmem:[#allocation5 + $0x8] sm:$0xf0]  ;;  %v832_v51 = vor.u32 %v949_v41, %v829_v42  ;;  %v931_v52 = vld [vmem:[#allocation5 + $0xd4] sm:$0xf]  ;;  %v757_v53 = vld [vmem:[#allocation5 + $0xd8] sm:$0xf0] }
  0x2e   :  { %v947_v54 = vld [vmem:[#allocation5 + $0x154] sm:$0xf]  ;;  %v821_v55 = vld [vmem:[#allocation5 + $0x158] sm:$0xf0]  ;;  %v656_v56 = vor.u32 %v905_v46, %v653_v47  ;;  %v760_v58 = vor.u32 %v931_v52, %v757_v53  ;;  %v929_v60 = vld [vmem:[#allocation5 + $0xc4] sm:$0xf] }
  0x2f   :  { %393 = vmatpush.bf16.msra.mxu0 %v660_v13  ;;  %v959_v57 = vld [vmem:[#allocation8 + $0x30] sm:$0xff]  ;;  %v824_v59 = vor.u32 %v947_v54, %v821_v55  ;;  %v749_v61 = vld [vmem:[#allocation5 + $0xc8] sm:$0xf0]  ;;  %v945_v62 = vld [vmem:[#allocation5 + $0x144] sm:$0xf]  ;;  %s637_s19 = sshll.u32 %s1177_s5, 4  ;;  %s638_s19 = int_to_ptr.hbm [resolvable:$true] %s637_s19 }
  0x30   :  { %406 = vmatpush.bf16.msra.mxu1 %v724_v17  ;;  %v813_v63 = vld [vmem:[#allocation5 + $0x148] sm:$0xf0]  ;;  %v752_v1 = vor.u32 %v929_v60, %v749_v61  ;;  %v927_v3 = vld [vmem:[#allocation5 + $0xb4] sm:$0xf]  ;;  %v741_v4 = vld [vmem:[#allocation5 + $0xb8] sm:$0xf0] }
  0x31   :  { %419 = vmatpush.bf16.msra.mxu2 %v788_v18  ;;  %431 = vmatpush.bf16.msra.mxu3 %v672_v28  ;;  %v958_v0 = vld [vmem:[#allocation8 + $0x28] sm:$0xff]  ;;  %v816_v2 = vor.u32 %v945_v62, %v813_v63  ;;  %v943_v5 = vld [vmem:[#allocation5 + $0x134] sm:$0xf]  ;;  %v805_v6 = vld [vmem:[#allocation5 + $0x138] sm:$0xf0]  ;;  %v744_v8 = vor.u32 %v927_v3, %v741_v4 }
  0x32   :  { %v957_v7 = vld [vmem:[#allocation8 + $0x20] sm:$0xff]  ;;  %v808_v9 = vor.u32 %v943_v5, %v805_v6  ;;  %v733_v11 = vld [vmem:[#allocation5 + $0xa8] sm:$0xf0]  ;;  %v956_v14 = vld [vmem:[#allocation8 + $0x18] sm:$0xff] }
  0x33   :  { %394 = vmatpush.bf16.msra.mxu0 %v652_v30  ;;  %v925_v10 = vld [vmem:[#allocation5 + $0xa4] sm:$0xf]  ;;  %v797_v13 = vld [vmem:[#allocation5 + $0x128] sm:$0xf0]  ;;  %v923_v17 = vld [vmem:[#allocation5 + $0x94] sm:$0xf] }
  0x34   :  { %407 = vmatpush.bf16.msra.mxu1 %v716_v34  ;;  %v941_v12 = vld [vmem:[#allocation5 + $0x124] sm:$0xf]  ;;  %v736_v15 = vor.u32 %v925_v10, %v733_v11  ;;  %v725_v18 = vld [vmem:[#allocation5 + $0x98] sm:$0xf0]  ;;  %v939_v19 = vld [vmem:[#allocation5 + $0x114] sm:$0xf] }
  0x35   :  { %420 = vmatpush.bf16.msra.mxu2 %v780_v38  ;;  %432 = vmatpush.bf16.msra.mxu3 %v664_v44  ;;  %v800_v16 = vor.u32 %v941_v12, %v797_v13  ;;  %v789_v20 = vld [vmem:[#allocation5 + $0x118] sm:$0xf0]  ;;  %v728_v21 = vor.u32 %v923_v17, %v725_v18  ;;  %v921_v23 = vld [vmem:[#allocation5 + $0x84] sm:$0xf]  ;;  %v717_v24 = vld [vmem:[#allocation5 + $0x88] sm:$0xf0] }
  0x36   :  { %395 = vmatmul.bf16.vlgmr.msra.gmra.mxu0 %v141_v43  ;;  %v792_v22 = vor.u32 %v939_v19, %v789_v20  ;;  %v937_v25 = vld [vmem:[#allocation5 + $0x104] sm:$0xf]  ;;  %v781_v26 = vld [vmem:[#allocation5 + $0x108] sm:$0xf0]  ;;  %v720_v27 = vor.u32 %v921_v23, %v717_v24  ;;  %v955_v29 = vld [vmem:[#allocation8 + $0x10] sm:$0xff] }
  0x37   :  { %439 = vmatpush.bf16.msrb.mxu0 %v776_v35  ;;  %408 = vmatmul.bf16.vlgmr.msra.gmra.mxu1 %v1158_v45  ;;  %v784_v28 = vor.u32 %v937_v25, %v781_v26  ;;  %v968_v30 = vld [vmem:[#allocation8 + $0x78] sm:$0xff]  ;;  %v954_v31 = vld [vmem:[#allocation8 + $0x8] sm:$0xff]  ;;  %v967_v32 = vld [vmem:[#allocation8 + $0x70] sm:$0xff] }
  0x38   :  { %452 = vmatpush.bf16.msrb.mxu1 %v840_v37  ;;  %421 = vmatmul.bf16.vlgmr.msra.gmra.mxu2 %v1160_v49  ;;  %v953_v33 = vld [vmem:[#allocation8] sm:$0xff]  ;;  %v966_v34 = vld [vmem:[#allocation8 + $0x68] sm:$0xff]  ;;  %v964_v36 = vld [vmem:[#allocation8 + $0x58] sm:$0xff] }
  0x39   :  { %601 = vmatpush.bf16.msrb.mxu2 %v960_v50  ;;  %433 = vmatpush.bf16.msra.mxu3 %v656_v56  ;;  %v965_v35 = vld [vmem:[#allocation8 + $0x60] sm:$0xff]  ;;  %v963_v37 = vld [vmem:[#allocation8 + $0x50] sm:$0xff]  ;;  %v130_v38 = vld [vmem:[#allocation7] sm:$0x3] }
  0x3a   :  { %v132_v39 = vperm.slane %v130_v38, 0  ;;  %v962_v40 = vld [vmem:[#allocation8 + $0x48] sm:$0xff]  ;;  %v961_v44 = vld [vmem:[#allocation8 + $0x40] sm:$0xff]  ;;  %v133_v55 = vperm.slane %v130_v38, 1  ;;  %v978_v3 = vld [vmem:[%s1176_s4] ss:$0 sm:$0xff] }
  0x3b   :  { %440 = vmatpush.bf16.msrb.mxu0 %v768_v48 }
  0x3c   :  { %453 = vmatpush.bf16.msrb.mxu1 %v832_v51  ;;  %434 = vmatmul.bf16.vlgmr.msra.gmra.mxu3 %v141_v43 }
  0x3d   :  { %602 = vmatpush.bf16.msrb.mxu2 %v959_v57  ;;  %614 = vmatpush.bf16.msrb.mxu3 %v968_v30 }
  0x3f   :  { %441 = vmatpush.bf16.msrb.mxu0 %v760_v58 }
  0x40   :  { %454 = vmatpush.bf16.msrb.mxu1 %v824_v59 }
  0x41   :  { %603 = vmatpush.bf16.msrb.mxu2 %v958_v0  ;;  %615 = vmatpush.bf16.msrb.mxu3 %v967_v32 }
  0x43   :  { %442 = vmatpush.bf16.msrb.mxu0 %v752_v1 }
  0x44   :  { %455 = vmatpush.bf16.msrb.mxu1 %v816_v2 }
  0x45   :  { %604 = vmatpush.bf16.msrb.mxu2 %v957_v7  ;;  %616 = vmatpush.bf16.msrb.mxu3 %v966_v34 }
  0x47   :  { %443 = vmatpush.bf16.msrb.mxu0 %v744_v8 }
  0x48   :  { %456 = vmatpush.bf16.msrb.mxu1 %v808_v9 }
  0x49   :  { %605 = vmatpush.bf16.msrb.mxu2 %v956_v14  ;;  %617 = vmatpush.bf16.msrb.mxu3 %v965_v35 }
  0x4b   :  { %444 = vmatpush.bf16.msrb.mxu0 %v736_v15 }
  0x4c   :  { %457 = vmatpush.bf16.msrb.mxu1 %v800_v16 }
  0x4d   :  { %606 = vmatpush.bf16.msrb.mxu2 %v955_v29  ;;  %618 = vmatpush.bf16.msrb.mxu3 %v964_v36 }
  0x4f   :  { %445 = vmatpush.bf16.msrb.mxu0 %v728_v21 }
  0x50   :  { %458 = vmatpush.bf16.msrb.mxu1 %v792_v22 }
  0x51   :  { %607 = vmatpush.bf16.msrb.mxu2 %v954_v31  ;;  %619 = vmatpush.bf16.msrb.mxu3 %v963_v37 }
  0x53   :  { %446 = vmatpush.bf16.msrb.mxu0 %v720_v27 }
  0x54   :  { %459 = vmatpush.bf16.msrb.mxu1 %v784_v28 }
  0x55   :  { %608 = vmatpush.bf16.msrb.mxu2 %v953_v33  ;;  %620 = vmatpush.bf16.msrb.mxu3 %v962_v40 }
  0x56   :  { %447 = vmatmul.bf16.vlgmr.msrb.gmra.mxu0 %v1158_v45 }
  0x57   :  { %460 = vmatmul.bf16.vlgmr.msrb.gmra.mxu1 %v1160_v49 }
  0x59   :  { %621 = vmatpush.bf16.msrb.mxu3 %v961_v44 }
  0xb3   :  { %v396_v41 = vpop.f32.mrf.mxu0 }
  0xb4   :  { %v397_v42 = vadd.f32 %v396_v41, %v132_v39  ;;  %v409_v43 = vpop.f32.mrf.mxu1 }
  0xb6   :  { %v410_v45 = vadd.f32 %v409_v43, %v397_v42 }
  0xbb   :  { %v422_v46 = vpop.f32.mrf.mxu2  ;;  %v398_v47 = vpop.f32.mrf.mxu0 }
  0xbc   :  { %v423_v48 = vadd.f32 %v422_v46, %v410_v45  ;;  %v411_v49 = vpop.f32.mrf.mxu1 }
  0xbe   :  { %v465_v50 = vmax.f32 %v423_v48, 0.0 }
  0xbf   :  { %v435_v52 = vpop.f32.mrf.mxu3 }
  0xc0   :  { %v467_v51 = vpack.c.bf16 %v465_v50, %v465_v50  ;;  %v436_v56 = vadd.f32 %v435_v52, %v133_v55 }
  0xc2   :  { %609 = vmatmul.bf16.vlgmr.msrb.gmra.mxu2 %v467_v51 }
  0xc3   :  { %v424_v53 = vpop.f32.mrf.mxu2 }
  0xc7   :  { %v437_v54 = vpop.f32.mrf.mxu3 }
  0xd3   :  { %v448_v57 = vpop.f32.mrf.mxu0 }
  0xd4   :  { %v449_v58 = vadd.f32 %v448_v57, %v436_v56  ;;  %v461_v59 = vpop.f32.mrf.mxu1 }
  0xd6   :  { %v462_v60 = vadd.f32 %v461_v59, %v449_v58 }
  0xd8   :  { %v466_v61 = vmax.f32 %v462_v60, 0.0 }
  0xda   :  { %v468_v62 = vpack.c.bf16 %v466_v61, %v466_v61 }
  0xdb   :  { %v450_v63 = vpop.f32.mrf.mxu0 }
  0xdc   :  { %v463_v0 = vpop.f32.mrf.mxu1  ;;  %622 = vmatmul.bf16.vlgmr.msrb.gmra.mxu3 %v468_v62 }
 0x145   :  { %v610_v1 = vpop.f32.mrf.mxu2 }
 0x146   :  { %v611_v4 = vadd.f32 %v978_v3, %v610_v1 }
 0x14d   :  { %v612_v2 = vpop.f32.mrf.mxu2 }
 0x15f   :  { %v623_v5 = vpop.f32.mrf.mxu3 }
 0x160   :  { %v624_v6 = vadd.f32 %v623_v5, %v611_v4 }
 0x162   :  { %v627_v7 = vmax.f32 %v624_v6, 0.0 }
 0x164   :  { %v628_v8 = vpack.c.bf16 %v627_v7, %v627_v7 }
 0x166   :  { %629 = vst [vmem:[#allocation10] sm:$0xf] %v628_v8 }
 0x167   :  { %v625_v9 = vpop.f32.mrf.mxu3  ;;  %640 = dma.vmem_to_hbm [thread:$0]  %s636_s16, 64, %s638_s19, [#allocation4]  }
 0x168   :  { %1105 = dma.done.wait [#allocation4], 64  }
 0x169   :  { %1106 = vsyncadd [#allocation4], 4294967232 }
 0x16a   :  { %645 = vsyncpa [#allocation3], 1 }
 0x16b   :  { %646 = vsyncpa [#allocation6], 1 }
 0x16c   :  { %647 = vsyncpa [#allocation9], 1 }
 0x16d   :  { %648 = vsyncpa [#allocation4], 1 }

</bundles_post_ra>
